<compile_context>
chip_gen: v7x
topology: tpu7x:2x2x1
jax: 0.10.0
libtpu: 0.0.40
codegen_flags: <defaults>
</compile_context>

<pallas_src>
import functools

import jax
import jax.numpy as jnp
from jax.experimental import pallas as pl
from jax.experimental.pallas import tpu as pltpu


# ---------------------------------------------------------------------------
# Small helpers
# ---------------------------------------------------------------------------

def _cdiv(a, b):
    return -(-a // b)


def _round_up(x, m):
    return _cdiv(x, m) * m


def _tpu_budgets():
    """(target_block_bytes, vmem_limit_bytes) derived per TPU generation."""
    vmem_cap = None
    try:
        info = pltpu.get_tpu_info()
        vmem_cap = getattr(info, "vmem_capacity_bytes", None)
    except Exception:
        vmem_cap = None
    if vmem_cap is None:
        vmem_cap = 64 * 1024 * 1024  # conservative: assume v7x-sized VMEM
    if vmem_cap >= 128 * 1024 * 1024:
        # v5e / v6e: 128 MiB VMEM -> big blocks, generous scoped limit.
        return 8 * 1024 * 1024, 64 * 1024 * 1024
    # v7x: 64 MiB per TensorCore -> keep 2x double-buffered input + f32
    # temporaries + scratch comfortably under the physical capacity.
    return 4 * 1024 * 1024, 40 * 1024 * 1024


def _choose_tile(extent, granule, bytes_per_unit, target_bytes):
    """Tile a reduction axis.

    Returns (tile, padded_extent, n_blocks) with tile a multiple of `granule`,
    padded_extent = n_blocks * tile >= extent, and padding kept minimal.
    """
    ext_g = _round_up(extent, granule)
    cap = max(granule, (target_bytes // max(1, bytes_per_unit)) // granule * granule)
    if ext_g <= cap:
        return ext_g, ext_g, 1
    n = _cdiv(ext_g, cap)
    tile = _round_up(_cdiv(ext_g, n), granule)
    return tile, n * tile, n


def _pick_tb(B, slab_bytes, target_bytes):
    """Largest divisor of B under the byte budget, keeping >= 2 batch blocks
    when B >= 2 so the 'parallel' grid axis can shard across v7x's two TCs."""
    cap = max(1, target_bytes // max(1, slab_bytes))
    if B >= 2:
        cap = min(cap, B // 2)
    tb = 1
    for d in range(1, B + 1):
        if B % d == 0 and d <= cap:
            tb = d
    return tb


# ---------------------------------------------------------------------------
# Kernels
# ---------------------------------------------------------------------------

def _sw_flat_kernel(x_ref, sw_ref, *, dim):
    """hasCor=False: streaming sum of squares over a (TB, TR, 128) slab.

    Accumulates directly into the VMEM-resident (TB, 1, 1) output block (its
    index_map ignores the reduction axis); /dim is applied only at finalize.
    """
    s = pl.program_id(1)

    @pl.when(s == 0)
    def _init():
        sw_ref[...] = jnp.zeros_like(sw_ref)

    xf = x_ref[...].astype(jnp.float32)                      # (TB, TR, 128)
    sq = xf * xf
    part = jnp.sum(jnp.sum(sq, axis=2, keepdims=True),        # lane reduce
                   axis=1, keepdims=True)                     # sublane reduce
    sw_ref[...] += part

    @pl.when(s == pl.num_programs(1) - 1)
    def _finalize():
        sw_ref[...] = sw_ref[...] / float(dim)


def _cor_kernel(x_ref, sw_ref, sb_ref, acc_d_ref, acc_t_ref, *, dim):
    """hasCor=True: streaming reduction over a (TB, C, TS) slab.

    Lane-wide f32 accumulators (cross-lane reduce deferred to finalize):
      acc_d[b, 0, s] += sum_c X[b, c, s]^2      (diagonal of G)
      acc_t[b, 0, s] += (sum_c X[b, c, s])^2     (sum of all entries of G)
    """
    s = pl.program_id(1)

    @pl.when(s == 0)
    def _init():
        acc_d_ref[...] = jnp.zeros_like(acc_d_ref)
        acc_t_ref[...] = jnp.zeros_like(acc_t_ref)

    xf = x_ref[...].astype(jnp.float32)                       # (TB, C, TS)
    acc_d_ref[...] += jnp.sum(xf * xf, axis=1, keepdims=True)  # sublane reduce
    col = jnp.sum(xf, axis=1, keepdims=True)                   # (TB, 1, TS)
    acc_t_ref[...] += col * col                                 # pure VPU

    @pl.when(s == pl.num_programs(1) - 1)
    def _finalize():
        d = jnp.sum(acc_d_ref[...], axis=2, keepdims=True)      # (TB, 1, 1)
        t = jnp.sum(acc_t_ref[...], axis=2, keepdims=True)
        sw_ref[...] = d / float(dim)
        # Strict upper triangle of the symmetric Gram matrix.  The divisor
        # dim*(dim+1)/2 reproduces the PyTorch quirk (do NOT "fix").
        sb_ref[...] = (t - d) * 0.5 / float(int(dim * (dim + 1) / 2))


# ---------------------------------------------------------------------------
# pallas_call wrappers
# ---------------------------------------------------------------------------

def _sw_pallas(x, dim, target_block_bytes, vmem_limit_bytes):
    """Per-batch Sw = sum(X^2) / dim via a fully dense (B, rows, 128) stream."""
    B = x.shape[0]
    itemsize = jnp.dtype(x.dtype).itemsize
    L0 = 1
    for d in x.shape[1:]:
        L0 *= int(d)
    Xf = x.reshape(B, L0)

    rows0 = _cdiv(L0, 128)
    TR, R_pad, n_s = _choose_tile(rows0, 8, 128 * itemsize, target_block_bytes)
    L_pad = R_pad * 128
    if L_pad != L0:
        Xf = jnp.pad(Xf, ((0, 0), (0, L_pad - L0)))  # zeros: exact for sum(x^2)
    X = Xf.reshape(B, R_pad, 128)

    TB = _pick_tb(B, TR * 128 * itemsize, target_block_bytes) if n_s == 1 else 1
    grid = (B // TB, n_s)

    cost = pl.CostEstimate(
        flops=int(3 * B * L_pad),
        transcendentals=0,
        bytes_accessed=int(B * L_pad * itemsize + B * 4),
    )

    sw = pl.pallas_call(
        functools.partial(_sw_flat_kernel, dim=dim),
        out_shape=jax.ShapeDtypeStruct((B, 1, 1), jnp.float32),
        grid_spec=pltpu.PrefetchScalarGridSpec(
            num_scalar_prefetch=0,
            grid=grid,
            in_specs=[pl.BlockSpec((TB, TR, 128), lambda i, s: (i, s, 0))],
            out_specs=pl.BlockSpec((TB, 1, 1), lambda i, s: (i, 0, 0)),
        ),
        compiler_params=pltpu.CompilerParams(
            dimension_semantics=("parallel", "arbitrary"),
            vmem_limit_bytes=vmem_limit_bytes,
        ),
        cost_estimate=cost,
    )(X)
    return sw[:, 0, 0]


def _cor_pallas(x, dim, target_block_bytes, vmem_limit_bytes):
    """Per-batch (Sw, Sb) via a (B, C, S_pad) stream (channel structure kept)."""
    B, C = int(x.shape[0]), int(x.shape[1])
    itemsize = jnp.dtype(x.dtype).itemsize
    S0 = 1
    for d in x.shape[2:]:
        S0 *= int(d)
    X = x.reshape(B, C, S0)

    TS, S_pad, n_s = _choose_tile(S0, 128, C * itemsize, target_block_bytes)
    if S_pad != S0:
        # Zero padding is exact for both sum-of-squares and squared column sums.
        X = jnp.pad(X, ((0, 0), (0, 0), (0, S_pad - S0)))

    slab_bytes = C * TS * itemsize + 2 * TS * 4  # input block + f32 scratch rows
    TB = _pick_tb(B, slab_bytes, target_block_bytes) if n_s == 1 else 1
    grid = (B // TB, n_s)

    cost = pl.CostEstimate(
        flops=int(5 * B * C * S_pad),
        transcendentals=0,
        bytes_accessed=int(B * C * S_pad * itemsize + 2 * B * 4),
    )

    sw, sb = pl.pallas_call(
        functools.partial(_cor_kernel, dim=dim),
        out_shape=(jax.ShapeDtypeStruct((B, 1, 1), jnp.float32),
                   jax.ShapeDtypeStruct((B, 1, 1), jnp.float32)),
        grid_spec=pltpu.PrefetchScalarGridSpec(
            num_scalar_prefetch=0,
            grid=grid,
            in_specs=[pl.BlockSpec((TB, C, TS), lambda i, s: (i, 0, s))],
            out_specs=(pl.BlockSpec((TB, 1, 1), lambda i, s: (i, 0, 0)),
                       pl.BlockSpec((TB, 1, 1), lambda i, s: (i, 0, 0))),
            scratch_shapes=[pltpu.VMEM((TB, 1, TS), jnp.float32),
                            pltpu.VMEM((TB, 1, TS), jnp.float32)],
        ),
        compiler_params=pltpu.CompilerParams(
            dimension_semantics=("parallel", "arbitrary"),
            vmem_limit_bytes=vmem_limit_bytes,
        ),
        cost_estimate=cost,
    )(X)
    return sw[:, 0, 0], sb[:, 0, 0]


def cor_loss(x, dim=None, hasCor=False, norm=False, *,
             target_block_bytes=None, vmem_limit_bytes=None):
    """x: (B, C, H, W), any float dtype.  dim must equal C (as in the module)."""
    B, C = int(x.shape[0]), int(x.shape[1])
    if dim is None:
        dim = C
    assert dim == C, "CorLoss requires dim == number of channels"

    tgt_default, vmem_default = _tpu_budgets()
    if target_block_bytes is None:
        target_block_bytes = tgt_default
    if vmem_limit_bytes is None:
        vmem_limit_bytes = vmem_default

    if hasCor:
        Sw, Sb = _cor_pallas(x, dim, target_block_bytes, vmem_limit_bytes)
    else:
        Sw = _sw_pallas(x, dim, target_block_bytes, vmem_limit_bytes)
        Sb = None

    if norm:  # _signed_sqrt
        Sw = jnp.sign(Sw) * jnp.sqrt(jnp.abs(Sw) + 1e-8)
        if Sb is not None:
            Sb = jnp.sign(Sb) * jnp.sqrt(jnp.abs(Sb) + 1e-8)

    if hasCor:
        return jnp.mean(Sw) - jnp.mean(Sb)
    return jnp.mean(Sw)


# ---------------------------------------------------------------------------
# Pure-JAX reference (mirrors the PyTorch forward, default / non-fisher path)
# ---------------------------------------------------------------------------

def _reference_loss(x, dim, hasCor=False, norm=False):
    B, C, H, W = x.shape
    X = x.reshape(B, C, H * W).astype(jnp.float32)
    G = jnp.einsum("bcs,bds->bcd", X, X)
    diag = jnp.trace(G, axis1=1, axis2=2)
    triu_mask = jnp.triu(jnp.ones((C, C), jnp.float32), k=1)
    triu = jnp.sum(G * triu_mask, axis=(1, 2))
    Sw = diag / dim
    Sb = triu / int(dim * (dim + 1) / 2)
    if norm:
        Sw = jnp.sign(Sw) * jnp.sqrt(jnp.abs(Sw) + 1e-8)
        Sb = jnp.sign(Sb) * jnp.sqrt(jnp.abs(Sb) + 1e-8)
    if hasCor:
        return jnp.mean(Sw) - jnp.mean(Sb)
    return jnp.mean(Sw)


if __name__ == "__main__":
    key = jax.random.PRNGKey(0)
    B, C, H, W = 2, 4, 16, 16            # dim == C == 4, S = 256
    x = jax.random.normal(key, (B, C, H, W), dtype=jnp.float32)

    # Default path (hasCor=False, norm=False): loss = mean(Sw).
    loss = jax.block_until_ready(cor_loss(x, dim=C))
    ref = jax.block_until_ready(_reference_loss(x, C))
    assert jnp.allclose(loss, ref, rtol=1e-4, atol=1e-4), (loss, ref)

    # hasCor + norm path (exercises the Sb / triu reduction + signed sqrt).
    loss2 = jax.block_until_ready(cor_loss(x, dim=C, hasCor=True, norm=True))
    ref2 = jax.block_until_ready(_reference_loss(x, C, hasCor=True, norm=True))
    assert jnp.allclose(loss2, ref2, rtol=1e-4, atol=1e-4), (loss2, ref2)

    # Force reduction-axis tiling on both paths (VMEM-resident accumulators).
    x3 = jax.random.normal(jax.random.PRNGKey(1), (2, 4, 32, 32), jnp.float32)
    loss3 = jax.block_until_ready(
        cor_loss(x3, dim=4, hasCor=True, target_block_bytes=2048))
    ref3 = jax.block_until_ready(_reference_loss(x3, 4, hasCor=True))
    assert jnp.allclose(loss3, ref3, rtol=1e-4, atol=1e-4), (loss3, ref3)
    loss3b = jax.block_until_ready(cor_loss(x3, dim=4, target_block_bytes=2048))
    ref3b = jax.block_until_ready(_reference_loss(x3, 4))
    assert jnp.allclose(loss3b, ref3b, rtol=1e-4, atol=1e-4), (loss3b, ref3b)

    # Spatial size that is NOT a 128-multiple -> exercises the zero-padding path.
    x4 = jax.random.normal(jax.random.PRNGKey(2), (2, 4, 10, 10), jnp.float32)
    loss4 = jax.block_until_ready(cor_loss(x4, dim=4, hasCor=True))
    ref4 = jax.block_until_ready(_reference_loss(x4, 4, hasCor=True))
    assert jnp.allclose(loss4, ref4, rtol=1e-4, atol=1e-4), (loss4, ref4)

    # Native-dtype streaming: bf16 in HBM, f32 accumulation in-kernel.
    xb = x.astype(jnp.bfloat16)
    loss5 = jax.block_until_ready(cor_loss(xb, dim=C))
    ref5 = jax.block_until_ready(_reference_loss(xb.astype(jnp.float32), C))
    assert jnp.allclose(loss5, ref5, rtol=2e-3, atol=2e-3), (loss5, ref5)

    print("KERNEL_OK")
</pallas_src>

<mosaic_0001>
module attributes {stable_mosaic.version = 11 : i64} {
  func.func @_sw_flat_kernel(%arg0: i32, %arg1: i32, %arg2: memref<1x8x128xf32, #tpu.memory_space<vmem>>, %arg3: memref<1x1x1xf32, #tpu.memory_space<vmem>>) attributes {dimension_semantics = [#tpu.dimension_semantics<parallel>, #tpu.dimension_semantics<arbitrary>], iteration_bounds = array<i64: 2, 1>, scalar_prefetch = 0 : i64, scratch_operands = 0 : i64, tpu.core_type = #tpu.core_type<tc>, window_params = [{transform_indices = @transform_0, window_bounds = array<i64: 1, 8, 128>}, {transform_indices = @transform_1, window_bounds = array<i64: 1, 1, 1>}]} {
    %c0_i32 = arith.constant 0 : i32
    %0 = arith.cmpi eq, %arg1, %c0_i32 : i32
    %1 = arith.extui %0 : i1 to i32
    %c0_i32_0 = arith.constant 0 : i32
    %2 = arith.cmpi ne, %1, %c0_i32_0 : i32
    scf.if %2 {
      %cst_12 = arith.constant 0.000000e+00 : f32
      %15 = vector.broadcast %cst_12 : f32 to vector<1x1x1xf32>
      %c0_13 = arith.constant 0 : index
      %c0_14 = arith.constant 0 : index
      %c0_15 = arith.constant 0 : index
      %16 = vector.load %arg3[%c0_13, %c0_14, %c0_15] : memref<1x1x1xf32, #tpu.memory_space<vmem>>, vector<1x1x1xf32>
      tpu.vector_store %arg3[%c0_13, %c0_14, %c0_15], %15 {strides = array<i32>} : memref<1x1x1xf32, #tpu.memory_space<vmem>>, vector<1x1x1xf32>,
    } else {
    }
    %c0 = arith.constant 0 : index
    %c0_1 = arith.constant 0 : index
    %c0_2 = arith.constant 0 : index
    %3 = vector.load %arg2[%c0, %c0_1, %c0_2] : memref<1x8x128xf32, #tpu.memory_space<vmem>>, vector<1x8x128xf32>
    %4 = arith.mulf %3, %3 : vector<1x8x128xf32>
    %cst = arith.constant dense<0.000000e+00> : vector<1x8xf32>
    %5 = vector.multi_reduction <add>, %4, %cst [2] : vector<1x8x128xf32> to vector<1x8xf32>
    %6 = vector.shape_cast %5 : vector<1x8xf32> to vector<1x8x1xf32>
    %cst_3 = arith.constant dense<0.000000e+00> : vector<1x1xf32>
    %7 = vector.multi_reduction <add>, %6, %cst_3 [1] : vector<1x8x1xf32> to vector<1x1xf32>
    %8 = vector.shape_cast %7 : vector<1x1xf32> to vector<1x1x1xf32>
    %c0_4 = arith.constant 0 : index
    %c0_5 = arith.constant 0 : index
    %c0_6 = arith.constant 0 : index
    %9 = vector.load %arg3[%c0_4, %c0_5, %c0_6] : memref<1x1x1xf32, #tpu.memory_space<vmem>>, vector<1x1x1xf32>
    %10 = arith.addf %9, %8 : vector<1x1x1xf32>
    %c0_7 = arith.constant 0 : index
    %c0_8 = arith.constant 0 : index
    %c0_9 = arith.constant 0 : index
    %11 = vector.load %arg3[%c0_7, %c0_8, %c0_9] : memref<1x1x1xf32, #tpu.memory_space<vmem>>, vector<1x1x1xf32>
    tpu.vector_store %arg3[%c0_7, %c0_8, %c0_9], %10 {strides = array<i32>} : memref<1x1x1xf32, #tpu.memory_space<vmem>>, vector<1x1x1xf32>,
    %c0_i32_10 = arith.constant 0 : i32
    %12 = arith.cmpi eq, %arg1, %c0_i32_10 : i32
    %13 = arith.extui %12 : i1 to i32
    %c0_i32_11 = arith.constant 0 : i32
    %14 = arith.cmpi ne, %13, %c0_i32_11 : i32
    scf.if %14 {
      %c0_12 = arith.constant 0 : index
      %c0_13 = arith.constant 0 : index
      %c0_14 = arith.constant 0 : index
      %15 = vector.load %arg3[%c0_12, %c0_13, %c0_14] : memref<1x1x1xf32, #tpu.memory_space<vmem>>, vector<1x1x1xf32>
      %cst_15 = arith.constant 4.000000e+00 : f32
      %16 = vector.broadcast %cst_15 : f32 to vector<1x1x1xf32>
      %17 = arith.divf %15, %16 : vector<1x1x1xf32>
      %c0_16 = arith.constant 0 : index
      %c0_17 = arith.constant 0 : index
      %c0_18 = arith.constant 0 : index
      %18 = vector.load %arg3[%c0_16, %c0_17, %c0_18] : memref<1x1x1xf32, #tpu.memory_space<vmem>>, vector<1x1x1xf32>
      tpu.vector_store %arg3[%c0_16, %c0_17, %c0_18], %17 {strides = array<i32>} : memref<1x1x1xf32, #tpu.memory_space<vmem>>, vector<1x1x1xf32>,
    } else {
    }
    return
  }
  func.func @transform_0(%arg0: i32, %arg1: i32) -> (i32, i32, i32) {
    %c0_i32 = arith.constant 0 : i32
    %c0_i32_0 = arith.constant 0 : i32
    return %arg0, %arg1, %c0_i32 : i32, i32, i32
  }
  func.func @transform_1(%arg0: i32, %arg1: i32) -> (i32, i32, i32) {
    %c0_i32 = arith.constant 0 : i32
    %c0_i32_0 = arith.constant 0 : i32
    %c0_i32_1 = arith.constant 0 : i32
    return %arg0, %c0_i32, %c0_i32_0 : i32, i32, i32
  }
}

</mosaic_0001>

<bundles_post_ra>
// kernel: tpu_custom_call.1
= control target key start
LH: loop header
LB: loop body
LE: loop exit
PB: predicated region body
PF: predicated region fallthrough
CT: control target
= control target key end

     0   :  { %6 = vsyncpa [#allocation3], 0  ;;  %s528_s0 = inlined_call_operand.hbm [shape: f32[2,8,128], index: 0, kind: input, shape index: {}]   ;;  %s529_s1 = inlined_call_operand.vmem [shape: f32[2,1,1], index: 1, kind: output, shape index: {}]  }
   0x1   :  { %8 = vsyncpa [#allocation3 + $0x1], 0  ;;  %s400_s6 = smov 0   ;;  %s402_s7 = smov 0  }
   0x2   :  { %s404_s8 = smov 0   ;;  %s406_s9 = smov 0  }
   0x3   :  { %s408_s10 = smov 0   ;;  %s410_s11 = smov 0  }
   0x4 LB: > { %s240_s12 = sadd.s32 4294967295, %s386_s11   ;;  %s26_s13 = sadd.s32 1, %s382_s10  ;;  %s386_s11 = sphi %s410_s11, %s14_s11   ;;  %s382_s10 = sphi %s408_s10, %s539_s10   ;;  %s378_s9 = sphi %s406_s9, %s538_s9   ;;  %s374_s8 = sphi %s404_s8, %s537_s8   ;;  %s370_s7 = sphi %s402_s7, %s536_s7   ;;  %s366_s6 = sphi %s400_s6, %s535_s6  }
   0x5   : > { %p28_p0 = scmp.ge.s32.totalorder %s26_s13, 2  ;;  %s35_s14 = sadd.s32 1, %s374_s8 }
   0x6   : > { %p42_p1 = scmp.ne.s32.totalorder %s374_s8, %s370_s7  ;;  %p43_p2 = scmp.eq.s32.totalorder %s386_s11, 0 }
   0x7   : > { %s541_s13 = smov (%p28_p0, %s26_s13), 0  ;;  %p48_p4 = scmp.ne.s32.totalorder %s370_s7, %s366_s6 }
   0x8   : > { %p436_p3 = por %p43_p2, %p42_p1  ;;  %s30_s16 = ssub.s32 %s382_s10, %s541_s13 }
   0x9   : > { %p49_p5 = scmp.eq.s32.totalorder %s240_s12, 0  ;;  %p33_p6 = scmp.eq.s32.totalorder %s30_s16, 0 }
   0xa   : > { %p256_p8 = scmp.lt.s32.totalorder %s386_s11, 2  ;;  %s98_s19 = sand.u32 1, %s374_s8  }
   0xb   : > { %p443_p7 = por %p49_p5, %p48_p4  ;;  %s245_s20 = sshll.u32 %s382_s10, 7 }
   0xc   : > { %s449_s18 = scalar_select %p33_p6, %s374_s8, %s35_s14  }
   0xd   : > { %s244_s21 = sshll.u32 %s98_s19, 3  ;;  %s456_s24 = scalar_lea.hbm %s528_s0, %s245_s20 }
   0xe   : > { %s102_s25 = scalar_lea.vmem [#allocation2], %s244_s21  ;;  %p460_p9 = pnand %p256_p8, %p436_p3 }
   0xf   : > { %s110_s26 = sshll.u32 %s102_s25, 4  ;;  %s99_s28 = scalar_lea.sflag [#allocation3], %s98_s19  ;;  %s464_s26 = int_to_ptr.vmem [resolvable:$true] %s110_s26 }
  0x10   : > { %s306_s29 = scalar_lea.hbm %s456_s24, 128  ;;  %p308_p13 = pneg %p460_p9 }
  0x11   : > { %p307_p12 = scmp.ne.s32.totalorder %s456_s24, %s306_s29  ;;  %s311_s3 = scalar_lea.hbm %s528_s0, 256 }
  0x12   : > { %p312_p2 = scmp.lt.u32.totalorder %s456_s24, %s528_s0  ;;  %p313_p3 = scmp.lt.u32.totalorder %s311_s3, %s306_s29 }
  0x13   : > { %p309_p0 = pnand %p308_p13, %p307_p12  ;;  %p315_p5 = scmp.lt.u32.totalorder %s306_s29, %s456_s24 }
  0x14   : > { %p314_p4 = por %p313_p3, %p312_p2 }
  0x15   : > { %p310_p1 = pneg %p309_p0 }
  0x16   : > { %p316_p6 = por %p315_p5, %p314_p4 }
  0x18   : > { %p317_p8 = pnand %p316_p6, %p310_p1 }
  0x1a   : > { %320 = shalt.err (!%p317_p8)
}
  0x1b   : > { %s321_s6 = scalar_lea.vmem %s464_s26, 128  ;;  %s388_s12 = smov [#allocation2]  }
  0x1c   : > { %p322_p12 = scmp.ne.s32.totalorder %s464_s26, %s321_s6  ;;  %s326_s14 = sshll.u32 %s388_s12, 4  ;;  %s327_s14 = int_to_ptr.vmem [resolvable:$false] %s326_s14 }
  0x1d   : > { %s328_s15 = scalar_lea.vmem %s327_s14, 256  ;;  %p329_p11 = scmp.lt.s32.totalorder %s464_s26, %s327_s14 }
  0x1e   : > { %p324_p0 = pnand %p322_p12, %p308_p13  ;;  %p330_p2 = scmp.lt.s32.totalorder %s328_s15, %s321_s6 }
  0x20   : > { %p325_p10 = pneg %p324_p0  ;;  %p331_p3 = por %p330_p2, %p329_p11 }
  0x22   : > { %p332_p4 = pnand %p331_p3, %p325_p10 }
  0x24   : > { %335 = shalt.err (!%p332_p4)
}
  0x25   : > { %255 = dma.hbm_to_vmem [thread:$0]  (!%p460_p9), %s456_s24, 128, %s464_s26, %s99_s28  }
  0x26   : > { %p533_p1 = scmp.lt.s32.totalorder %s386_s11, 3  ;;  %p534_p5 = scmp.ge.s32.totalorder %s386_s11, 1 }
  0x28   : > { %p116_p13 = pnand %p534_p5, %p533_p1 }
  0x29   : > { %s121_s16 = sand.u32 (!%p116_p13), 1, %s370_s7  }
  0x2a   : > { %119 = sbr.rel (%p116_p13) target bundleno = 220 (0xdc), region = 24  ;;  %s247_s19 = sshll.u32 (!%p116_p13), %s121_s16, 3 }
  0x2b   : > { %s122_s20 = scalar_lea.sflag (!%p116_p13), [#allocation3], %s121_s16  ;;  %s125_s21 = scalar_lea.vmem (!%p116_p13), [#allocation2], %s247_s19 }
  0x31   : > { %361 = dma.done.wait (%p443_p7), %s122_s20, 128  }
  0x32   : > { %363 = vsyncadd (%p443_p7), %s122_s20, 4294967168  ;;  %p142_p10 = scmp.lt.s32.totalorder %s378_s9, 1  ;;  %vm149_vm0 = vcmask 0   ;;  %v389_v0 = vmov 0.0   ;;  %v151_v1 = vld [vmem:[%s125_s21] sm:$0xff] }
  0x33   : > { %v152_v2 = vmul.f32 %v151_v1, %v151_v1 }
  0x34   : > { %s543_s9 = smov (!%p142_p10, %s378_s9), 1 }
  0x35   : > { %s144_s24 = scalar_lea.vmem %s529_s1, %s543_s9  ;;  %153 = vadd.xlane.f32.xlu0 %v152_v2 }
  0x36   : > { %150 = vst.msk [vmem:[%s144_s24] sm:$0x1] %vm149_vm0, %v389_v0 }
  0x3d   : > { %v161_v9 = vld [vmem:[%s144_s24] sm:$0x1] }
  0xc2   : > { %v154_v3 = vpop.xlane.xlu0 %153 }
  0xc3   : > { %v155_v4 = vrot.slane %v154_v3, 4 }
  0xc5   : > { %v156_v5 = vadd.f32 %v155_v4, %v154_v3 }
  0xc7   : > { %v157_v6 = vrot.slane %v156_v5, 2 }
  0xc9   : > { %v158_v7 = vadd.f32 %v157_v6, %v156_v5 }
  0xcb   : > { %v159_v8 = vrot.slane %v158_v7, 1 }
  0xcd   : > { %v160_v10 = vadd.f32 %v159_v8, %v158_v7 }
  0xcf   : > { %v162_v11 = vadd.f32 %v161_v9, %v160_v10 }
  0xd1   : > { %164 = vst.msk [vmem:[%s144_s24] sm:$0x1] %vm149_vm0, %v162_v11 }
  0xd8   : > { %v168_v12 = vld [vmem:[%s144_s24] sm:$0x1] }
  0xd9   : > { %v170_v13 = vmul.f32 0.25, %v168_v12 }
  0xdb   : > { %171 = vst.msk [vmem:[%s144_s24] sm:$0x1] %vm149_vm0, %v170_v13 }
  0xdc PF: > { %s14_s11 = sadd.s32 1, %s386_s11   ;;  %s535_s6 = smov %s370_s7 }
  0xdd   : > { %p11_p7 = scmp.ge.s32.totalorder %s14_s11, 4   ;;  %s536_s7 = smov %s374_s8 }
  0xde   : > { %s537_s8 = smov %s449_s18  ;;  %s538_s9 = smov %s382_s10 }
  0xdf   : > { %s539_s10 = smov %s541_s13  ;;  %13 = sbr.rel (!%p11_p7) target bundleno = 4 (0x4), region = 72 }
  0xe6   :  { %189 = vsyncpa [#allocation3], 1 }
  0xe7   :  { %191 = vsyncpa [#allocation3 + $0x1], 1 }

</bundles_post_ra>
